<compile_context>
chip_gen: v7x
topology: tpu7x:2x2x1
jax: 0.10.0
libtpu: 0.0.40
codegen_flags: <defaults>
</compile_context>

<pallas_src>
import functools

import jax
import jax.numpy as jnp
from jax import lax
from jax.experimental import pallas as pl
from jax.experimental.pallas import tpu as pltpu


def _ode_mlp_kernel(n_layers, tanh_reg, bf16_act, batch_first_x, x_ref, *refs):
    """refs = [w0, b0, w1, b1, ..., w_{L-1}, b_{L-1}, reg_smem, outT].

    x_ref is (d_in, tb) (features-first) or (tb, d_in) (batch-first); the
    output tile is always lane-dense (d_out, tb).
    """
    out_ref = refs[-1]                                   # (d_out, tb)
    reg_ref = refs[-2]                                   # (1,) f32 in SMEM

    h = x_ref[...]
    for i in range(n_layers):
        w = refs[2 * i][...]                             # (out_i, in_i)
        b = refs[2 * i + 1][...]                         # (out_i, 1), f32
        if i == 0 and batch_first_x:
            # In-kernel transpose of the layer-0 input: contract d_in of both
            # (out0, d_in) x (tb, d_in) -> (out0, tb).  Avoids a wrapper-side
            # x.T HBM round trip.
            h = lax.dot_general(w, h.astype(w.dtype),
                                dimension_numbers=(((1,), (1,)), ((), ())),
                                preferred_element_type=jnp.float32) + b
        else:
            h = jnp.dot(w, h.astype(w.dtype),
                        preferred_element_type=jnp.float32) + b
        if i < n_layers - 1:
            if bf16_act:
                # v6e/v7x bf16 EUP: tanh in bf16 halves pressure on the
                # binding EUP slot; the result feeds the next bf16 matmul
                # anyway.  (Not used on v5e.)
                h = jnp.tanh(h.astype(jnp.bfloat16))
            else:
                h = jnp.tanh(h)
    if tanh_reg:
        # 1/reg_factor was folded into the last layer's W/b at prepare time,
        # so only the outer scale remains (single VPU multiply).
        h = reg_ref[0] * jnp.tanh(h.astype(jnp.float32))
    out_ref[...] = h.astype(out_ref.dtype)


def prepare_ode_params(weights, biases, reg_factor, *, tanh_reg=True,
                       use_bf16_matmul=False):
    """One-time parameter preparation (hoisted out of the per-RHS-call path).

    Casts weights to the compute dtype, folds 1/reg_factor into the last
    layer when tanh_reg is enabled, and builds the SMEM scalar.
    """
    compute_dtype = jnp.bfloat16 if use_bf16_matmul else jnp.float32
    reg = jnp.asarray(reg_factor, jnp.float32).reshape((1,))
    ws = [jnp.asarray(w, jnp.float32) for w in weights]
    bs = [jnp.asarray(b, jnp.float32).reshape(-1, 1) for b in biases]
    if tanh_reg:
        # TODO(synk): no guard for reg_factor ~ 0 (matches torch's out/reg).
        inv = 1.0 / reg[0]
        ws = ws[:-1] + [ws[-1] * inv]
        bs = bs[:-1] + [bs[-1] * inv]
    ws = tuple(w.astype(compute_dtype) for w in ws)
    bs = tuple(b.astype(jnp.float32) for b in bs)
    return {"weights": ws, "biases": bs, "reg": reg, "tanh_reg": bool(tanh_reg),
            "use_bf16_matmul": bool(use_bf16_matmul)}


def _choose_batch_tile(batch, requested):
    """Return (tile, padded_batch).

    Small batches run as a single full-batch block (always layout-legal).
    Large batches use a 128-aligned tile and pad the batch up to a multiple of
    the tile instead of falling back to an oversized single block.
    """
    if batch <= requested:
        return batch, batch
    tb = max(128, (requested // 128) * 128)
    padded = ((batch + tb - 1) // tb) * tb
    return tb, padded


def _ode_pallas(x_arr, params, *, tb, batch_first):
    ws, bs, reg = params["weights"], params["biases"], params["reg"]
    tanh_reg = params["tanh_reg"]
    bf16_act = params["use_bf16_matmul"]
    n_layers = len(ws)
    d_out = int(ws[-1].shape[0])

    if batch_first:
        B, d_in = x_arr.shape
    else:
        d_in, B = x_arr.shape
    B, d_in = int(B), int(d_in)

    tb_, Bp = _choose_batch_tile(B, tb)
    if Bp != B:
        pad = Bp - B
        pad_cfg = ((0, pad), (0, 0)) if batch_first else ((0, 0), (0, pad))
        x_arr = jnp.pad(x_arr, pad_cfg)
    grid = (Bp // tb_,)

    if batch_first:
        x_spec = pl.BlockSpec((tb_, d_in), lambda i: (i, 0))
    else:
        x_spec = pl.BlockSpec((d_in, tb_), lambda i: (0, i))

    in_specs = [x_spec]
    args = [x_arr]
    for w, b in zip(ws, bs):
        # Constant across the grid: stage once in VMEM, no double-buffering,
        # no per-step DMA.
        in_specs.append(pl.BlockSpec(memory_space=pltpu.MemorySpace.VMEM))
        in_specs.append(pl.BlockSpec(memory_space=pltpu.MemorySpace.VMEM))
        args += [w, b]
    in_specs.append(pl.BlockSpec(memory_space=pltpu.MemorySpace.SMEM))
    args.append(reg)

    # Advisory cost estimate so XLA schedules neighbors around this tiny kernel.
    w_elt = 2 if ws[0].dtype == jnp.bfloat16 else 4
    x_elt = x_arr.dtype.itemsize
    flops = 2 * Bp * sum(int(w.shape[0]) * int(w.shape[1]) for w in ws)
    transcendentals = Bp * sum(int(w.shape[0]) for w in ws[:-1])
    if tanh_reg:
        transcendentals += Bp * d_out
    bytes_accessed = (Bp * d_in * x_elt + Bp * d_out * 4
                      + sum(int(w.size) for w in ws) * w_elt
                      + sum(int(b.size) for b in bs) * 4)
    cost = pl.CostEstimate(flops=int(flops),
                           transcendentals=int(transcendentals),
                           bytes_accessed=int(bytes_accessed))

    # Explicit VMEM bound with headroom (catches oversized tiles at compile
    # time; 32 MiB cap is within every generation's scoped budget, incl. v7x).
    max_width = max(int(w.shape[0]) for w in ws)
    vmem_est = (2 * d_in * tb_ * x_elt                   # double-buffered input tile
                + 2 * d_out * tb_ * 4                    # double-buffered output tile
                + sum(int(w.size) for w in ws) * w_elt
                + sum(int(b.size) for b in bs) * 4
                + 4 * max_width * tb_ * 4)               # hidden-activation headroom
    vmem_limit = int(min(max(4 * vmem_est, 8 * 1024 * 1024), 32 * 1024 * 1024))

    kernel = functools.partial(_ode_mlp_kernel, n_layers, tanh_reg, bf16_act,
                               batch_first)
    outT = pl.pallas_call(
        kernel,
        out_shape=jax.ShapeDtypeStruct((d_out, Bp), jnp.float32),
        grid=grid,
        in_specs=in_specs,
        out_specs=pl.BlockSpec((d_out, tb_), lambda i: (0, i)),
        compiler_params=pltpu.CompilerParams(
            dimension_semantics=("parallel",),
            vmem_limit_bytes=vmem_limit,
        ),
        cost_estimate=cost,
    )(*args)
    if Bp != B:
        outT = outT[:, :B]
    return outT


def ode_forward_features_first(xT, params, *, tb=2048):
    """Recommended path: xT is (d_in, B), returns (d_out, B).

    Zero wrapper-side transposes or casts -- keep the whole ODE-solver state
    in (features, batch) layout (and in the compute dtype) and this is the
    only op per RHS evaluation.  On v7x, pass tb ~= round_down(B/2, 128) so
    both TensorCores get one large grid step each.
    """
    return _ode_pallas(xT, params, tb=tb, batch_first=False)


def ode_forward(x, params, *, tb=2048):
    """PyTorch-compatible path: x is (B, d_in), returns (B, d_out).

    The layer-0 transpose happens inside the kernel (lax.dot_general), so the
    only extra HBM pass vs. the features-first path is the final transpose.
    """
    outT = _ode_pallas(x, params, tb=tb, batch_first=True)
    return outT.T


def init_ode_params(key, input_shape, output_shape, ode_layers, ode_width):
    """Deterministic PyTorch-style Linear init: U(-1/sqrt(fan_in), 1/sqrt(fan_in)).
    Weights stored as (out_features, in_features), biases as (out_features, 1)."""
    dims = [input_shape, ode_width] + [ode_width] * ode_layers + [output_shape]
    weights, biases = [], []
    for d_in, d_out in zip(dims[:-1], dims[1:]):
        key, kw, kb = jax.random.split(key, 3)
        bound = float(d_in) ** -0.5
        w = jax.random.uniform(kw, (d_out, d_in), jnp.float32, -bound, bound)
        b = jax.random.uniform(kb, (d_out, 1), jnp.float32, -bound, bound)
        weights.append(w)
        biases.append(b)
    reg_factor = jnp.ones((1,), jnp.float32)  # torch.nn.Parameter(torch.tensor(1.0))
    return weights, biases, reg_factor


def ode_reference(x, weights, biases, reg_factor, tanh_reg=True):
    h = x
    n = len(weights)
    for i, (w, b) in enumerate(zip(weights, biases)):
        h = h @ w.T + b[:, 0]
        if i < n - 1:
            h = jnp.tanh(h)
    if tanh_reg:
        h = reg_factor[0] * jnp.tanh(h / reg_factor[0])
    return h


if __name__ == "__main__":
    # Module hyperparameters (small, consistent with the forward pass).
    input_shape = 16     # latent dim in
    output_shape = 16    # latent dim out
    ode_layers = 2
    ode_width = 64
    tanh_reg = True
    batch = 256          # <= default tb -> single grid step (no per-step overhead)

    key = jax.random.PRNGKey(0)
    key, kx = jax.random.split(key)
    x = jax.random.normal(kx, (batch, input_shape), jnp.float32)

    weights, biases, reg_factor = init_ode_params(
        key, input_shape, output_shape, ode_layers, ode_width)

    ref = ode_reference(x, weights, biases, reg_factor, tanh_reg=tanh_reg)

    # --- f32 path (all chips), features-first solver-state layout (no wrapper
    #     transposes; xT would live across the whole ODE integration). ---
    params_f32 = prepare_ode_params(weights, biases, reg_factor,
                                    tanh_reg=tanh_reg, use_bf16_matmul=False)
    xT = x.T                                             # built once, not per call
    outT = jax.block_until_ready(ode_forward_features_first(xT, params_f32))
    assert outT.shape == (output_shape, batch)
    assert jnp.allclose(outT.T, ref, atol=1e-4, rtol=1e-4), \
        "f32 features-first kernel mismatch vs reference"

    # --- f32 path, PyTorch-compatible (batch, features) interface
    #     (layer-0 transpose folded into the kernel). ---
    out = jax.block_until_ready(ode_forward(x, params_f32))
    assert out.shape == (batch, output_shape)
    assert jnp.allclose(out, ref, atol=1e-4, rtol=1e-4), \
        "f32 batch-first kernel mismatch vs reference"

    # --- bf16 MXU + bf16 hidden-tanh path (v6e / v7x); accumulation and the
    #     final tanh_reg tanh stay f32. ---
    # TODO(synk): bf16 activations compound rounding error through the hidden
    #             tanh layers vs. PyTorch's f64 reference; acceptable here.
    params_bf16 = prepare_ode_params(weights, biases, reg_factor,
                                     tanh_reg=tanh_reg, use_bf16_matmul=True)
    xT_bf16 = x.T.astype(jnp.bfloat16)                   # held in compute dtype once
    outT_bf16 = jax.block_until_ready(
        ode_forward_features_first(xT_bf16, params_bf16))
    assert jnp.allclose(outT_bf16.T, ref, atol=8e-2), \
        "bf16 kernel mismatch vs reference"

    print("KERNEL_OK")
</pallas_src>

<mosaic_0001>
module attributes {stable_mosaic.version = 11 : i64} {
  func.func @_ode_mlp_kernel(%arg0: i32, %arg1: memref<16x256xf32, #tpu.memory_space<vmem>>, %arg2: memref<64x16xf32, #tpu.memory_space<vmem>>, %arg3: memref<64x1xf32, #tpu.memory_space<vmem>>, %arg4: memref<64x64xf32, #tpu.memory_space<vmem>>, %arg5: memref<64x1xf32, #tpu.memory_space<vmem>>, %arg6: memref<64x64xf32, #tpu.memory_space<vmem>>, %arg7: memref<64x1xf32, #tpu.memory_space<vmem>>, %arg8: memref<16x64xf32, #tpu.memory_space<vmem>>, %arg9: memref<16x1xf32, #tpu.memory_space<vmem>>, %arg10: memref<1xf32, #tpu.memory_space<smem>>, %arg11: memref<16x256xf32, #tpu.memory_space<vmem>>) attributes {dimension_semantics = [#tpu.dimension_semantics<parallel>], iteration_bounds = array<i64: 1>, scalar_prefetch = 0 : i64, scratch_operands = 0 : i64, tpu.core_type = #tpu.core_type<tc>, window_params = [{transform_indices = @transform_0, window_bounds = array<i64: 16, 256>}, {pipeline_mode = #tpu.pipeline_mode<synchronous>, transform_indices = @transform_1, window_bounds = array<i64: 64, 16>}, {pipeline_mode = #tpu.pipeline_mode<synchronous>, transform_indices = @transform_2, window_bounds = array<i64: 64, 1>}, {pipeline_mode = #tpu.pipeline_mode<synchronous>, transform_indices = @transform_3, window_bounds = array<i64: 64, 64>}, {pipeline_mode = #tpu.pipeline_mode<synchronous>, transform_indices = @transform_4, window_bounds = array<i64: 64, 1>}, {pipeline_mode = #tpu.pipeline_mode<synchronous>, transform_indices = @transform_5, window_bounds = array<i64: 64, 64>}, {pipeline_mode = #tpu.pipeline_mode<synchronous>, transform_indices = @transform_6, window_bounds = array<i64: 64, 1>}, {pipeline_mode = #tpu.pipeline_mode<synchronous>, transform_indices = @transform_7, window_bounds = array<i64: 16, 64>}, {pipeline_mode = #tpu.pipeline_mode<synchronous>, transform_indices = @transform_8, window_bounds = array<i64: 16, 1>}, {transform_indices = @transform_9, window_bounds = array<i64: 1>}, {transform_indices = @transform_10, window_bounds = array<i64: 16, 256>}]} {
    %c0 = arith.constant 0 : index
    %c0_0 = arith.constant 0 : index
    %0 = vector.load %arg1[%c0, %c0_0] : memref<16x256xf32, #tpu.memory_space<vmem>>, vector<16x256xf32>
    %c0_1 = arith.constant 0 : index
    %c0_2 = arith.constant 0 : index
    %1 = vector.load %arg2[%c0_1, %c0_2] : memref<64x16xf32, #tpu.memory_space<vmem>>, vector<64x16xf32>
    %c0_3 = arith.constant 0 : index
    %c0_4 = arith.constant 0 : index
    %2 = vector.load %arg3[%c0_3, %c0_4] : memref<64x1xf32, #tpu.memory_space<vmem>>, vector<64x1xf32>
    %cst = arith.constant dense<0.000000e+00> : vector<64x256xf32>
    %3 = tpu.matmul %1, %0, %cst {dimension_numbers = #tpu.dot_dimension_numbers<[1], [0], [0], [1], [0, 0, 1, 1], [], []>} : vector<64x16xf32>, vector<16x256xf32>, vector<64x256xf32> -> vector<64x256xf32>
    %4 = vector.broadcast %2 : vector<64x1xf32> to vector<64x256xf32>
    %5 = arith.addf %3, %4 : vector<64x256xf32>
    %6 = math.tanh %5 : vector<64x256xf32>
    %c0_5 = arith.constant 0 : index
    %c0_6 = arith.constant 0 : index
    %7 = vector.load %arg4[%c0_5, %c0_6] : memref<64x64xf32, #tpu.memory_space<vmem>>, vector<64x64xf32>
    %c0_7 = arith.constant 0 : index
    %c0_8 = arith.constant 0 : index
    %8 = vector.load %arg5[%c0_7, %c0_8] : memref<64x1xf32, #tpu.memory_space<vmem>>, vector<64x1xf32>
    %cst_9 = arith.constant dense<0.000000e+00> : vector<64x256xf32>
    %9 = tpu.matmul %7, %6, %cst_9 {dimension_numbers = #tpu.dot_dimension_numbers<[1], [0], [0], [1], [0, 0, 1, 1], [], []>} : vector<64x64xf32>, vector<64x256xf32>, vector<64x256xf32> -> vector<64x256xf32>
    %10 = vector.broadcast %8 : vector<64x1xf32> to vector<64x256xf32>
    %11 = arith.addf %9, %10 : vector<64x256xf32>
    %12 = math.tanh %11 : vector<64x256xf32>
    %c0_10 = arith.constant 0 : index
    %c0_11 = arith.constant 0 : index
    %13 = vector.load %arg6[%c0_10, %c0_11] : memref<64x64xf32, #tpu.memory_space<vmem>>, vector<64x64xf32>
    %c0_12 = arith.constant 0 : index
    %c0_13 = arith.constant 0 : index
    %14 = vector.load %arg7[%c0_12, %c0_13] : memref<64x1xf32, #tpu.memory_space<vmem>>, vector<64x1xf32>
    %cst_14 = arith.constant dense<0.000000e+00> : vector<64x256xf32>
    %15 = tpu.matmul %13, %12, %cst_14 {dimension_numbers = #tpu.dot_dimension_numbers<[1], [0], [0], [1], [0, 0, 1, 1], [], []>} : vector<64x64xf32>, vector<64x256xf32>, vector<64x256xf32> -> vector<64x256xf32>
    %16 = vector.broadcast %14 : vector<64x1xf32> to vector<64x256xf32>
    %17 = arith.addf %15, %16 : vector<64x256xf32>
    %18 = math.tanh %17 : vector<64x256xf32>
    %c0_15 = arith.constant 0 : index
    %c0_16 = arith.constant 0 : index
    %19 = vector.load %arg8[%c0_15, %c0_16] : memref<16x64xf32, #tpu.memory_space<vmem>>, vector<16x64xf32>
    %c0_17 = arith.constant 0 : index
    %c0_18 = arith.constant 0 : index
    %20 = vector.load %arg9[%c0_17, %c0_18] : memref<16x1xf32, #tpu.memory_space<vmem>>, vector<16x1xf32>
    %cst_19 = arith.constant dense<0.000000e+00> : vector<16x256xf32>
    %21 = tpu.matmul %19, %18, %cst_19 {dimension_numbers = #tpu.dot_dimension_numbers<[1], [0], [0], [1], [0, 0, 1, 1], [], []>} : vector<16x64xf32>, vector<64x256xf32>, vector<16x256xf32> -> vector<16x256xf32>
    %22 = vector.broadcast %20 : vector<16x1xf32> to vector<16x256xf32>
    %23 = arith.addf %21, %22 : vector<16x256xf32>
    %c0_20 = arith.constant 0 : index
    %24 = memref.load %arg10[%c0_20] : memref<1xf32, #tpu.memory_space<smem>>
    %25 = math.tanh %23 : vector<16x256xf32>
    %26 = vector.broadcast %24 : f32 to vector<16x256xf32>
    %27 = arith.mulf %26, %25 : vector<16x256xf32>
    %c0_21 = arith.constant 0 : index
    %c0_22 = arith.constant 0 : index
    %28 = vector.load %arg11[%c0_21, %c0_22] : memref<16x256xf32, #tpu.memory_space<vmem>>, vector<16x256xf32>
    tpu.vector_store %arg11[%c0_21, %c0_22], %27 {strides = array<i32>} : memref<16x256xf32, #tpu.memory_space<vmem>>, vector<16x256xf32>,
    return
  }
  func.func @transform_0(%arg0: i32) -> (i32, i32) {
    %c0_i32 = arith.constant 0 : i32
    %c0_i32_0 = arith.constant 0 : i32
    return %c0_i32, %arg0 : i32, i32
  }
  func.func @transform_1(%arg0: i32) -> (i32, i32) {
    %c0_i32 = arith.constant 0 : i32
    %c0_i32_0 = arith.constant 0 : i32
    %c0_i32_1 = arith.constant 0 : i32
    return %c0_i32, %c0_i32_0 : i32, i32
  }
  func.func @transform_2(%arg0: i32) -> (i32, i32) {
    %c0_i32 = arith.constant 0 : i32
    %c0_i32_0 = arith.constant 0 : i32
    %c0_i32_1 = arith.constant 0 : i32
    return %c0_i32, %c0_i32_0 : i32, i32
  }
  func.func @transform_3(%arg0: i32) -> (i32, i32) {
    %c0_i32 = arith.constant 0 : i32
    %c0_i32_0 = arith.constant 0 : i32
    %c0_i32_1 = arith.constant 0 : i32
    return %c0_i32, %c0_i32_0 : i32, i32
  }
  func.func @transform_4(%arg0: i32) -> (i32, i32) {
    %c0_i32 = arith.constant 0 : i32
    %c0_i32_0 = arith.constant 0 : i32
    %c0_i32_1 = arith.constant 0 : i32
    return %c0_i32, %c0_i32_0 : i32, i32
  }
  func.func @transform_5(%arg0: i32) -> (i32, i32) {
    %c0_i32 = arith.constant 0 : i32
    %c0_i32_0 = arith.constant 0 : i32
    %c0_i32_1 = arith.constant 0 : i32
    return %c0_i32, %c0_i32_0 : i32, i32
  }
  func.func @transform_6(%arg0: i32) -> (i32, i32) {
    %c0_i32 = arith.constant 0 : i32
    %c0_i32_0 = arith.constant 0 : i32
    %c0_i32_1 = arith.constant 0 : i32
    return %c0_i32, %c0_i32_0 : i32, i32
  }
  func.func @transform_7(%arg0: i32) -> (i32, i32) {
    %c0_i32 = arith.constant 0 : i32
    %c0_i32_0 = arith.constant 0 : i32
    %c0_i32_1 = arith.constant 0 : i32
    return %c0_i32, %c0_i32_0 : i32, i32
  }
  func.func @transform_8(%arg0: i32) -> (i32, i32) {
    %c0_i32 = arith.constant 0 : i32
    %c0_i32_0 = arith.constant 0 : i32
    %c0_i32_1 = arith.constant 0 : i32
    return %c0_i32, %c0_i32_0 : i32, i32
  }
  func.func @transform_9(%arg0: i32) -> i32 {
    %c0_i32 = arith.constant 0 : i32
    %c0_i32_0 = arith.constant 0 : i32
    return %c0_i32 : i32
  }
  func.func @transform_10(%arg0: i32) -> (i32, i32) {
    %c0_i32 = arith.constant 0 : i32
    %c0_i32_0 = arith.constant 0 : i32
    return %c0_i32, %arg0 : i32, i32
  }
}

</mosaic_0001>

<bundles_post_ra>
// kernel: tpu_custom_call.1
= control target key start
LH: loop header
LB: loop body
LE: loop exit
PB: predicated region body
PF: predicated region fallthrough
CT: control target
= control target key end

     0   :  { %v1020_v5 = vmov 0.0   ;;  %v1021_v7 = vmov 0   ;;  %vm97_vm0 = vcmask 130048   ;;  %s1315_s0 = inlined_call_operand.vmem [shape: f32[16,256], index: 0, kind: input, shape index: {}]   ;;  %s1316_s1 = inlined_call_operand.vmem [shape: f32[64,16], index: 1, kind: input, shape index: {}]   ;;  %s1317_s2 = inlined_call_operand.vmem [shape: f32[64,1], index: 2, kind: input, shape index: {}]   ;;  %s1318_s3 = inlined_call_operand.vmem [shape: f32[64,64], index: 3, kind: input, shape index: {}]   ;;  %s1319_s4 = inlined_call_operand.vmem [shape: f32[64,1], index: 4, kind: input, shape index: {}]   ;;  %s1320_s5 = inlined_call_operand.vmem [shape: f32[64,64], index: 5, kind: input, shape index: {}]   ;;  %s1321_s6 = inlined_call_operand.vmem [shape: f32[64,1], index: 6, kind: input, shape index: {}]   ;;  %s1322_s7 = inlined_call_operand.vmem [shape: f32[16,64], index: 7, kind: input, shape index: {}]   ;;  %s1323_s8 = inlined_call_operand.vmem [shape: f32[16,1], index: 8, kind: input, shape index: {}]   ;;  %s1324_s9 = inlined_call_operand.<no memory space> [shape: f32[1], index: 9, kind: input, shape index: {}]   ;;  %s1325_s10 = inlined_call_operand.hbm [shape: f32[16,256], index: 10, kind: output, shape index: {}]  }
   0x1   :  { %v38_v0 = vld [vmem:[%s1315_s0 + $0x8] sm:$0xff]  ;;  %v40_v1 = vld [vmem:[%s1315_s0 + $0x18] sm:$0xff]  ;;  %v37_v2 = vld [vmem:[%s1315_s0] sm:$0xff]  ;;  %186 = vmatprep.mubr.f32.mxu0 %v1020_v5  ;;  %210 = vmatprep.mubr.f32.mxu1 %v1020_v5 }
   0x2   :  { %v823_v3 = vpack.c.bf16 %v40_v1, %v38_v0  ;;  %v39_v4 = vld [vmem:[%s1315_s0 + $0x10] sm:$0xff]  ;;  %890 = vset.pattern.permute.xlu0 %v1021_v7  ;;  %891 = vset.pattern.permute.xlu1 %v1021_v7  ;;  %v41_v8 = vld [vmem:[%s1316_s1] sm:$0xff]  ;;  %v50_v12 = vld [vmem:[%s1317_s2 + $0x8] sm:$0xff] }
   0x3   :  { %v825_v6 = vpack.c.bf16 %v39_v4, %v37_v2  ;;  %v45_v9 = vld [vmem:[%s1316_s1 + $0x20] sm:$0xff]  ;;  %v51_v11 = vld [vmem:[%s1317_s2 + $0x10] sm:$0xff]  ;;  %v52_v13 = vld [vmem:[%s1317_s2 + $0x18] sm:$0xff] }
   0x4   :  { %824 = vmatprep.subr.bf16.mxu0 %v823_v3  ;;  %875 = vmatprep.subr.bf16.mxu1 %v823_v3  ;;  %v49_v10 = vld [vmem:[%s1317_s2] sm:$0xff]  ;;  %v42_v14 = vld [vmem:[%s1316_s1 + $0x8] sm:$0xff]  ;;  %v43_v18 = vld [vmem:[%s1316_s1 + $0x10] sm:$0xff] }
   0x5   :  { %826 = vmatpush1.bf16.msra.mxu0 %v825_v6  ;;  %876 = vmatpush1.bf16.msra.mxu1 %v825_v6  ;;  %v46_v15 = vld [vmem:[%s1316_s1 + $0x28] sm:$0xff]  ;;  %v53_v16 = vld [vmem:[%s1317_s2 + $0x20] sm:$0xff]  ;;  %v47_v19 = vld [vmem:[%s1316_s1 + $0x30] sm:$0xff] }
   0x6   :  { %59 = vperm.xlu0 %890, %v49_v10   ;;  %69 = vperm.xlu1 %891, %v51_v11   ;;  %v54_v17 = vld [vmem:[%s1317_s2 + $0x28] sm:$0xff] }
   0x8   :  { %797 = vmatmul.mubr.msk.f32.vlgmr.msra.gmra.mrb[0].mxu0 %vm97_vm0, %v41_v8  ;;  %801 = vmatmul.mubr.msk.f32.vlgmr.msra.gmra.mrb[0].mxu1 %vm97_vm0, %v45_v9 }
   0x9   :  { %192 = vmatprep.mubr.f32.mxu0 %v1020_v5  ;;  %216 = vmatprep.mubr.f32.mxu1 %v1020_v5 }
   0xa   :  { %64 = vperm.xlu0 %890, %v50_v12   ;;  %74 = vperm.xlu1 %891, %v52_v13  }
   0xc   :  { %798 = vmatmul.mubr.msk.f32.gmra.mrb[2].mxu0 %vm97_vm0, %v42_v14  ;;  %802 = vmatmul.mubr.msk.f32.gmra.mrb[2].mxu1 %vm97_vm0, %v46_v15 }
   0xd   :  { %198 = vmatprep.mubr.f32.mxu0 %v1020_v5  ;;  %222 = vmatprep.mubr.f32.mxu1 %v1020_v5 }
   0xe   :  { %16 = vsyncpa [#allocation4], 0  ;;  %79 = vperm.xlu0 %890, %v53_v16   ;;  %84 = vperm.xlu1 %891, %v54_v17   ;;  %v55_v20 = vld [vmem:[%s1317_s2 + $0x30] sm:$0xff]  ;;  %v56_v21 = vld [vmem:[%s1317_s2 + $0x38] sm:$0xff]  ;;  %vm307_vm1 = vcmask 523264   ;;  %s1022_s27 = smov [#allocation3]  }
   0xf   :  { %v44_v22 = vld [vmem:[%s1316_s1 + $0x18] sm:$0xff]  ;;  %v259_v24 = vld [vmem:[%s1319_s4] sm:$0xff]  ;;  %v260_v25 = vld [vmem:[%s1319_s4 + $0x8] sm:$0xff]  ;;  %s786_s28 = sshll.u32 %s1022_s27, 4  ;;  %s787_s28 = int_to_ptr.vmem [resolvable:$true] %s786_s28 }
  0x10   :  { %799 = vmatmul.mubr.msk.f32.gmra.mrb[4].mxu0 %vm97_vm0, %v43_v18  ;;  %803 = vmatmul.mubr.msk.f32.gmra.mrb[4].mxu1 %vm97_vm0, %v47_v19  ;;  %v48_v23 = vld [vmem:[%s1316_s1 + $0x38] sm:$0xff]  ;;  %v261_v26 = vld [vmem:[%s1319_s4 + $0x10] sm:$0xff]  ;;  %v263_v28 = vld [vmem:[%s1319_s4 + $0x20] sm:$0xff]  ;;  %s996_s29 = scalar_lea.vmem %s787_s28, 512  ;;  %p1001_p1 = scmp.lt.s32.totalorder %s787_s28, %s787_s28 }
  0x11   :  { %204 = vmatprep.mubr.f32.mxu0 %v1020_v5  ;;  %228 = vmatprep.mubr.f32.mxu1 %v1020_v5  ;;  %v262_v27 = vld [vmem:[%s1319_s4 + $0x18] sm:$0xff]  ;;  %v264_v29 = vld [vmem:[%s1319_s4 + $0x28] sm:$0xff]  ;;  %v265_v30 = vld [vmem:[%s1319_s4 + $0x30] sm:$0xff]  ;;  %p997_p0 = scmp.ne.s32.totalorder %s787_s28, %s996_s29  ;;  %p1002_p2 = scmp.lt.s32.totalorder %s996_s29, %s996_s29 }
  0x12   :  { %89 = vperm.xlu0 %890, %v55_v20   ;;  %94 = vperm.xlu1 %891, %v56_v21   ;;  %v266_v31 = vld [vmem:[%s1319_s4 + $0x38] sm:$0xff]  ;;  %v469_v32 = vld [vmem:[%s1321_s6] sm:$0xff]  ;;  %v470_v33 = vld [vmem:[%s1321_s6 + $0x8] sm:$0xff] }
  0x13   :  { %v471_v34 = vld [vmem:[%s1321_s6 + $0x10] sm:$0xff]  ;;  %v472_v35 = vld [vmem:[%s1321_s6 + $0x18] sm:$0xff]  ;;  %v473_v36 = vld [vmem:[%s1321_s6 + $0x20] sm:$0xff]  ;;  %p1003_p3 = por %p1002_p2, %p1001_p1 }
  0x14   :  { %800 = vmatmul.mubr.msk.f32.gmra.mrb[6].mxu0 %vm97_vm0, %v44_v22  ;;  %804 = vmatmul.mubr.msk.f32.gmra.mrb[6].mxu1 %vm97_vm0, %v48_v23  ;;  %v474_v37 = vld [vmem:[%s1321_s6 + $0x28] sm:$0xff]  ;;  %v475_v38 = vld [vmem:[%s1321_s6 + $0x30] sm:$0xff]  ;;  %v476_v39 = vld [vmem:[%s1321_s6 + $0x38] sm:$0xff] }
  0x15   :  { %396 = vmatprep.mubr.f32.mxu1 %v1020_v5  ;;  %605 = vmatprep.mubr.f32.mxu0 %v1020_v5  ;;  %v672_v40 = vld [vmem:[%s1323_s8] sm:$0xff]  ;;  %v673_v41 = vld [vmem:[%s1323_s8 + $0x8] sm:$0xff]  ;;  %p1004_p4 = pnand %p1003_p3, %p997_p0 }
  0x16   :  { %269 = vperm.xlu0 %890, %v259_v24   ;;  %274 = vperm.xlu1 %891, %v260_v25  }
  0x1a   :  { %279 = vperm.xlu0 %890, %v261_v26   ;;  %284 = vperm.xlu1 %891, %v262_v27  }
  0x1e   :  { %289 = vperm.xlu0 %890, %v263_v28   ;;  %294 = vperm.xlu1 %891, %v264_v29  }
  0x22   :  { %299 = vperm.xlu0 %890, %v265_v30   ;;  %304 = vperm.xlu1 %891, %v266_v31  }
  0x26   :  { %479 = vperm.xlu0 %890, %v469_v32   ;;  %484 = vperm.xlu1 %891, %v470_v33  }
  0x2a   :  { %489 = vperm.xlu0 %890, %v471_v34   ;;  %494 = vperm.xlu1 %891, %v472_v35  }
  0x2e   :  { %499 = vperm.xlu0 %890, %v473_v36   ;;  %504 = vperm.xlu1 %891, %v474_v37  }
  0x32   :  { %509 = vperm.xlu0 %890, %v475_v38   ;;  %514 = vperm.xlu1 %891, %v476_v39  }
  0x36   :  { %676 = vperm.xlu0 %890, %v672_v40   ;;  %681 = vperm.xlu1 %891, %v673_v41  }
  0x85   :  { %v60_v42 = vpop.permute.xlu0 %59  ;;  %v70_v43 = vpop.permute.xlu1 %69 }
  0x89   :  { %v65_v44 = vpop.permute.xlu0 %64  ;;  %v75_v45 = vpop.permute.xlu1 %74 }
  0x8d   :  { %v80_v46 = vpop.permute.xlu0 %79  ;;  %v85_v55 = vpop.permute.xlu1 %84 }
  0x91   :  { %v90_v0 = vpop.permute.xlu0 %89  ;;  %v95_v10 = vpop.permute.xlu1 %94 }
  0xdb   :  { %v188_v47 = vpop.f32.mrb[0].mxu0  ;;  %v212_v48 = vpop.f32.mrb[0].mxu1 }
  0xdc   :  { %v189_v49 = vadd.f32 %v188_v47, %v60_v42  ;;  %v190_v50 = vpop.f32.mrb[1].mxu0  ;;  %v213_v51 = vadd.f32 %v212_v48, %v80_v46  ;;  %v214_v52 = vpop.f32.mrb[1].mxu1  ;;  %v255_v47 = vld [vmem:[%s1318_s3 + $0x20] sm:$0xff]  ;;  %v256_v48 = vld [vmem:[%s1318_s3 + $0x28] sm:$0xff] }
  0xdd   :  { %v191_v53 = vadd.f32 %v190_v50, %v60_v42  ;;  %v215_v54 = vadd.f32 %v214_v52, %v80_v46  ;;  %v254_v46 = vld [vmem:[%s1318_s3 + $0x18] sm:$0xff] }
  0xde   :  { %892 = vtanh.f32 %v189_v49  ;;  %v257_v49 = vld [vmem:[%s1318_s3 + $0x30] sm:$0xff]  ;;  %v258_v50 = vld [vmem:[%s1318_s3 + $0x38] sm:$0xff] }
  0xdf   :  { %894 = vtanh.f32 %v191_v53  ;;  %v194_v56 = vpop.f32.mrb[2].mxu0  ;;  %v218_v57 = vpop.f32.mrb[2].mxu1 }
  0xe0   :  { %896 = vtanh.f32 %v213_v51  ;;  %v195_v58 = vadd.f32 %v194_v56, %v65_v44  ;;  %v219_v59 = vadd.f32 %v218_v57, %v85_v55  ;;  %v196_v60 = vpop.f32.mrb[3].mxu0  ;;  %v220_v61 = vpop.f32.mrb[3].mxu1 }
  0xe1   :  { %898 = vtanh.f32 %v215_v54  ;;  %v197_v62 = vadd.f32 %v196_v60, %v65_v44  ;;  %v221_v63 = vadd.f32 %v220_v61, %v85_v55  ;;  %v252_v44 = vld [vmem:[%s1318_s3 + $0x8] sm:$0xff]  ;;  %v270_v51 = vpop.permute.xlu0 %269  ;;  %v275_v56 = vpop.permute.xlu1 %274 }
  0xe2   :  { %900 = vtanh.f32 %v195_v58 }
  0xe3   :  { %902 = vtanh.f32 %v219_v59  ;;  %v200_v1 = vpop.f32.mrb[4].mxu0  ;;  %v224_v2 = vpop.f32.mrb[4].mxu1 }
  0xe4   :  { %904 = vtanh.f32 %v197_v62  ;;  %v201_v3 = vadd.f32 %v200_v1, %v70_v43  ;;  %v225_v4 = vadd.f32 %v224_v2, %v90_v0  ;;  %v202_v6 = vpop.f32.mrb[5].mxu0  ;;  %v226_v7 = vpop.f32.mrb[5].mxu1 }
  0xe5   :  { %906 = vtanh.f32 %v221_v63  ;;  %v203_v8 = vadd.f32 %v202_v6, %v70_v43  ;;  %v227_v9 = vadd.f32 %v226_v7, %v90_v0  ;;  %v251_v43 = vld [vmem:[%s1318_s3] sm:$0xff]  ;;  %v280_v61 = vpop.permute.xlu0 %279  ;;  %v285_v2 = vpop.permute.xlu1 %284 }
  0xe6   :  { %908 = vtanh.f32 %v201_v3 }
  0xe7   :  { %910 = vtanh.f32 %v225_v4  ;;  %v206_v11 = vpop.f32.mrb[6].mxu0  ;;  %v230_v12 = vpop.f32.mrb[6].mxu1 }
  0xe8   :  { %v893_v13 = vpop.eup %892  ;;  %912 = vtanh.f32 %v203_v8  ;;  %v207_v14 = vadd.f32 %v206_v11, %v75_v45  ;;  %v231_v15 = vadd.f32 %v230_v12, %v95_v10  ;;  %v208_v16 = vpop.f32.mrb[7].mxu0 }
  0xe9   :  { %v232_v17 = vpop.f32.mrb[7].mxu1  ;;  %v895_v18 = vpop.eup %894  ;;  %914 = vtanh.f32 %v227_v9  ;;  %v209_v19 = vadd.f32 %v208_v16, %v75_v45  ;;  %v253_v45 = vld [vmem:[%s1318_s3 + $0x10] sm:$0xff] }
  0xea   :  { %v233_v20 = vadd.f32 %v232_v17, %v95_v10  ;;  %v897_v21 = vpop.eup %896  ;;  %916 = vtanh.f32 %v207_v14  ;;  %v290_v10 = vpop.permute.xlu0 %289 }
  0xeb   :  { %v899_v22 = vpop.eup %898  ;;  %918 = vtanh.f32 %v231_v15 }
  0xec   :  { %v901_v23 = vpop.eup %900  ;;  %920 = vtanh.f32 %v209_v19  ;;  %v295_v19 = vpop.permute.xlu1 %294 }
  0xed   :  { %v903_v24 = vpop.eup %902  ;;  %922 = vtanh.f32 %v233_v20  ;;  %v829_v25 = vpack.c.bf16 %v901_v23, %v893_v13 }
  0xee   :  { %v905_v26 = vpop.eup %904  ;;  %v837_v27 = vpack.c.bf16 %v903_v24, %v897_v21 }
  0xef   :  { %v907_v28 = vpop.eup %906  ;;  %v827_v29 = vpack.c.bf16 %v905_v26, %v895_v18  ;;  %v300_v26 = vpop.permute.xlu0 %299 }
  0xf0   :  { %v909_v30 = vpop.eup %908  ;;  %v835_v31 = vpack.c.bf16 %v907_v28, %v899_v22 }
  0xf1   :  { %v911_v32 = vpop.eup %910  ;;  %828 = vmatprep.subr.bf16.mxu1 %v827_v29 }
  0xf2   :  { %v913_v33 = vpop.eup %912  ;;  %830 = vmatpush1.bf16.msra.mxu1 %v829_v25 }
  0xf3   :  { %v915_v34 = vpop.eup %914 }
  0xf4   :  { %v917_v35 = vpop.eup %916 }
  0xf5   :  { %v919_v36 = vpop.eup %918  ;;  %v833_v37 = vpack.c.bf16 %v917_v35, %v909_v30  ;;  %v305_v35 = vpop.permute.xlu1 %304 }
  0xf6   :  { %v921_v38 = vpop.eup %920  ;;  %v841_v39 = vpack.c.bf16 %v919_v36, %v911_v32 }
  0xf7   :  { %v923_v40 = vpop.eup %922  ;;  %v831_v41 = vpack.c.bf16 %v921_v38, %v913_v33 }
  0xf8   :  { %v839_v42 = vpack.c.bf16 %v923_v40, %v915_v34 }
  0xf9   :  { %832 = vmatprep.subr.bf16.mxu1 %v831_v41 }
  0xfa   :  { %834 = vmatpush1.bf16.msra.mxu1 %v833_v37 }
  0xfb   :  { %836 = vmatprep.subr.bf16.mxu1 %v835_v31 }
  0xfe   :  { %838 = vmatpush1.bf16.msra.mxu1 %v837_v27 }
  0xff   :  { %840 = vmatprep.subr.bf16.mxu1 %v839_v42 }
 0x102   :  { %842 = vmatpush1.bf16.msra.mxu1 %v841_v39 }
 0x105   :  { %805 = vmatmul.mubr.msk.f32.vlgmr.msra.gmra.mrb[8].mxu1 %vm307_vm1, %v251_v43 }
 0x106   :  { %402 = vmatprep.mubr.f32.mxu1 %v1020_v5 }
 0x109   :  { %806 = vmatmul.mubr.msk.f32.gmra.mrb[10].mxu1 %vm307_vm1, %v252_v44 }
 0x10a   :  { %408 = vmatprep.mubr.f32.mxu1 %v1020_v5 }
 0x10d   :  { %807 = vmatmul.mubr.msk.f32.gmra.mrb[12].mxu1 %vm307_vm1, %v253_v45 }
 0x10e   :  { %414 = vmatprep.mubr.f32.mxu1 %v1020_v5 }
 0x111   :  { %808 = vmatmul.mubr.msk.f32.gmra.mrb[14].mxu1 %vm307_vm1, %v254_v46 }
 0x112   :  { %420 = vmatprep.mubr.f32.mxu1 %v1020_v5 }
 0x115   :  { %809 = vmatmul.mubr.msk.f32.gmra.mrb[16].mxu1 %vm307_vm1, %v255_v47 }
 0x116   :  { %426 = vmatprep.mubr.f32.mxu1 %v1020_v5 }
 0x119   :  { %810 = vmatmul.mubr.msk.f32.gmra.mrb[18].mxu1 %vm307_vm1, %v256_v48 }
 0x11a   :  { %432 = vmatprep.mubr.f32.mxu1 %v1020_v5 }
 0x11d   :  { %811 = vmatmul.mubr.msk.f32.gmra.mrb[20].mxu1 %vm307_vm1, %v257_v49 }
 0x11e   :  { %438 = vmatprep.mubr.f32.mxu1 %v1020_v5 }
 0x121   :  { %812 = vmatmul.mubr.msk.f32.gmra.mrb[22].mxu1 %vm307_vm1, %v258_v50 }
 0x122   :  { %760 = vmatprep.mubr.f32.mxu1 %v1020_v5 }
 0x1d8   :  { %v398_v52 = vpop.f32.mrb[8].mxu1 }
 0x1d9   :  { %v399_v53 = vadd.f32 %v398_v52, %v270_v51  ;;  %v400_v54 = vpop.f32.mrb[9].mxu1  ;;  %v461_v52 = vld [vmem:[%s1320_s5] sm:$0xff] }
 0x1da   :  { %v401_v55 = vadd.f32 %v400_v54, %v270_v51  ;;  %v463_v54 = vld [vmem:[%s1320_s5 + $0x10] sm:$0xff] }
 0x1db   :  { %924 = vtanh.f32 %v399_v53  ;;  %v462_v53 = vld [vmem:[%s1320_s5 + $0x8] sm:$0xff] }
 0x1dc   :  { %v404_v57 = vpop.f32.mrb[10].mxu1  ;;  %926 = vtanh.f32 %v401_v55  ;;  %v464_v55 = vld [vmem:[%s1320_s5 + $0x18] sm:$0xff] }
 0x1dd   :  { %v405_v58 = vadd.f32 %v404_v57, %v275_v56  ;;  %v406_v59 = vpop.f32.mrb[11].mxu1  ;;  %v466_v57 = vld [vmem:[%s1320_s5 + $0x28] sm:$0xff] }
 0x1de   :  { %v407_v60 = vadd.f32 %v406_v59, %v275_v56  ;;  %v465_v56 = vld [vmem:[%s1320_s5 + $0x20] sm:$0xff]  ;;  %v468_v59 = vld [vmem:[%s1320_s5 + $0x38] sm:$0xff] }
 0x1df   :  { %928 = vtanh.f32 %v405_v58  ;;  %v467_v58 = vld [vmem:[%s1320_s5 + $0x30] sm:$0xff] }
 0x1e0   :  { %930 = vtanh.f32 %v407_v60  ;;  %v410_v62 = vpop.f32.mrb[12].mxu1  ;;  %v480_v60 = vpop.permute.xlu0 %479 }
 0x1e1   :  { %v411_v63 = vadd.f32 %v410_v62, %v280_v61  ;;  %v412_v0 = vpop.f32.mrb[13].mxu1 }
 0x1e2   :  { %v413_v1 = vadd.f32 %v412_v0, %v280_v61 }
 0x1e3   :  { %932 = vtanh.f32 %v411_v63 }
 0x1e4   :  { %v416_v3 = vpop.f32.mrb[14].mxu1  ;;  %934 = vtanh.f32 %v413_v1  ;;  %v485_v1 = vpop.permute.xlu1 %484 }
 0x1e5   :  { %v417_v4 = vadd.f32 %v416_v3, %v285_v2  ;;  %v418_v6 = vpop.f32.mrb[15].mxu1  ;;  %v925_v8 = vpop.eup %924 }
 0x1e6   :  { %v419_v7 = vadd.f32 %v418_v6, %v285_v2  ;;  %v927_v9 = vpop.eup %926 }
 0x1e7   :  { %936 = vtanh.f32 %v417_v4 }
 0x1e8   :  { %938 = vtanh.f32 %v419_v7  ;;  %v422_v11 = vpop.f32.mrb[16].mxu1  ;;  %v490_v7 = vpop.permute.xlu0 %489 }
 0x1e9   :  { %v929_v12 = vpop.eup %928  ;;  %v423_v13 = vadd.f32 %v422_v11, %v290_v10  ;;  %v424_v14 = vpop.f32.mrb[17].mxu1 }
 0x1ea   :  { %v931_v15 = vpop.eup %930  ;;  %v425_v16 = vadd.f32 %v424_v14, %v290_v10  ;;  %v845_v17 = vpack.c.bf16 %v929_v12, %v925_v8 }
 0x1eb   :  { %v843_v18 = vpack.c.bf16 %v931_v15, %v927_v9  ;;  %940 = vtanh.f32 %v423_v13 }
 0x1ec   :  { %v428_v20 = vpop.f32.mrb[18].mxu1  ;;  %942 = vtanh.f32 %v425_v16 }
 0x1ed   :  { %v429_v21 = vadd.f32 %v428_v20, %v295_v19  ;;  %v430_v22 = vpop.f32.mrb[19].mxu1  ;;  %844 = vmatprep.subr.bf16.mxu0 %v843_v18  ;;  %v933_v24 = vpop.eup %932 }
 0x1ee   :  { %v431_v23 = vadd.f32 %v430_v22, %v295_v19  ;;  %846 = vmatpush1.bf16.msra.mxu0 %v845_v17  ;;  %v935_v25 = vpop.eup %934  ;;  %v500_v18 = vpop.permute.xlu0 %499 }
 0x1ef   :  { %944 = vtanh.f32 %v429_v21 }
 0x1f0   :  { %946 = vtanh.f32 %v431_v23  ;;  %v434_v27 = vpop.f32.mrb[20].mxu1 }
 0x1f1   :  { %v937_v28 = vpop.eup %936  ;;  %v435_v29 = vadd.f32 %v434_v27, %v300_v26  ;;  %v436_v30 = vpop.f32.mrb[21].mxu1 }
 0x1f2   :  { %v939_v31 = vpop.eup %938  ;;  %v437_v32 = vadd.f32 %v436_v30, %v300_v26  ;;  %v849_v33 = vpack.c.bf16 %v937_v28, %v933_v24 }
 0x1f3   :  { %v847_v34 = vpack.c.bf16 %v939_v31, %v935_v25  ;;  %948 = vtanh.f32 %v435_v29 }
 0x1f4   :  { %v440_v36 = vpop.f32.mrb[22].mxu1  ;;  %950 = vtanh.f32 %v437_v32 }
 0x1f5   :  { %v441_v37 = vadd.f32 %v440_v36, %v305_v35  ;;  %v442_v38 = vpop.f32.mrb[23].mxu1  ;;  %848 = vmatprep.subr.bf16.mxu0 %v847_v34  ;;  %v941_v40 = vpop.eup %940 }
 0x1f6   :  { %v443_v39 = vadd.f32 %v442_v38, %v305_v35  ;;  %850 = vmatpush1.bf16.msra.mxu0 %v849_v33  ;;  %v943_v41 = vpop.eup %942  ;;  %v510_v34 = vpop.permute.xlu0 %509 }
 0x1f7   :  { %952 = vtanh.f32 %v441_v37 }
 0x1f8   :  { %954 = vtanh.f32 %v443_v39 }
 0x1f9   :  { %v945_v42 = vpop.eup %944 }
 0x1fa   :  { %v947_v43 = vpop.eup %946  ;;  %v853_v44 = vpack.c.bf16 %v945_v42, %v941_v40 }
 0x1fb   :  { %v851_v45 = vpack.c.bf16 %v947_v43, %v943_v41 }
 0x1fd   :  { %852 = vmatprep.subr.bf16.mxu0 %v851_v45  ;;  %v949_v46 = vpop.eup %948 }
 0x1fe   :  { %854 = vmatpush1.bf16.msra.mxu0 %v853_v44  ;;  %v951_v47 = vpop.eup %950 }
 0x201   :  { %v953_v48 = vpop.eup %952 }
 0x202   :  { %v955_v49 = vpop.eup %954  ;;  %v857_v50 = vpack.c.bf16 %v953_v48, %v949_v46 }
 0x203   :  { %v855_v51 = vpack.c.bf16 %v955_v49, %v951_v47 }
 0x205   :  { %856 = vmatprep.subr.bf16.mxu0 %v855_v51 }
 0x206   :  { %858 = vmatpush1.bf16.msra.mxu0 %v857_v50 }
 0x209   :  { %813 = vmatmul.mubr.msk.f32.vlgmr.msra.gmra.mrb[8].mxu0 %vm307_vm1, %v461_v52 }
 0x20a   :  { %611 = vmatprep.mubr.f32.mxu0 %v1020_v5 }
 0x20d   :  { %814 = vmatmul.mubr.msk.f32.gmra.mrb[10].mxu0 %vm307_vm1, %v462_v53 }
 0x20e   :  { %617 = vmatprep.mubr.f32.mxu0 %v1020_v5 }
 0x211   :  { %815 = vmatmul.mubr.msk.f32.gmra.mrb[12].mxu0 %vm307_vm1, %v463_v54 }
 0x212   :  { %623 = vmatprep.mubr.f32.mxu0 %v1020_v5 }
 0x215   :  { %816 = vmatmul.mubr.msk.f32.gmra.mrb[14].mxu0 %vm307_vm1, %v464_v55 }
 0x216   :  { %629 = vmatprep.mubr.f32.mxu0 %v1020_v5 }
 0x219   :  { %817 = vmatmul.mubr.msk.f32.gmra.mrb[16].mxu0 %vm307_vm1, %v465_v56 }
 0x21a   :  { %635 = vmatprep.mubr.f32.mxu0 %v1020_v5 }
 0x21d   :  { %818 = vmatmul.mubr.msk.f32.gmra.mrb[18].mxu0 %vm307_vm1, %v466_v57 }
 0x21e   :  { %641 = vmatprep.mubr.f32.mxu0 %v1020_v5 }
 0x221   :  { %819 = vmatmul.mubr.msk.f32.gmra.mrb[20].mxu0 %vm307_vm1, %v467_v58 }
 0x222   :  { %647 = vmatprep.mubr.f32.mxu0 %v1020_v5 }
 0x225   :  { %820 = vmatmul.mubr.msk.f32.gmra.mrb[22].mxu0 %vm307_vm1, %v468_v59 }
 0x226   :  { %754 = vmatprep.mubr.f32.mxu0 %v1020_v5  ;;  %v495_v5 = vpop.permute.xlu1 %494 }
 0x22a   :  { %v505_v27 = vpop.permute.xlu1 %504 }
 0x22e   :  { %v515_v43 = vpop.permute.xlu1 %514 }
 0x2dc   :  { %v607_v61 = vpop.f32.mrb[8].mxu0 }
 0x2dd   :  { %v608_v62 = vadd.f32 %v607_v61, %v480_v60  ;;  %v609_v63 = vpop.f32.mrb[9].mxu0  ;;  %v671_v61 = vld [vmem:[%s1322_s7 + $0x8] sm:$0xff] }
 0x2de   :  { %v610_v0 = vadd.f32 %v609_v63, %v480_v60  ;;  %v670_v60 = vld [vmem:[%s1322_s7] sm:$0xff]  ;;  %v682_v63 = vpop.permute.xlu1 %681 }
 0x2df   :  { %956 = vtanh.f32 %v608_v62  ;;  %v677_v62 = vpop.permute.xlu0 %676 }
 0x2e0   :  { %v613_v2 = vpop.f32.mrb[10].mxu0  ;;  %958 = vtanh.f32 %v610_v0 }
 0x2e1   :  { %v614_v3 = vadd.f32 %v613_v2, %v485_v1  ;;  %v615_v4 = vpop.f32.mrb[11].mxu0 }
 0x2e2   :  { %v616_v6 = vadd.f32 %v615_v4, %v485_v1 }
 0x2e3   :  { %960 = vtanh.f32 %v614_v3 }
 0x2e4   :  { %962 = vtanh.f32 %v616_v6  ;;  %v619_v8 = vpop.f32.mrb[12].mxu0 }
 0x2e5   :  { %v620_v9 = vadd.f32 %v619_v8, %v490_v7  ;;  %v621_v10 = vpop.f32.mrb[13].mxu0 }
 0x2e6   :  { %v622_v11 = vadd.f32 %v621_v10, %v490_v7 }
 0x2e7   :  { %964 = vtanh.f32 %v620_v9  ;;  %v772_v9 = vstv %s1324_s9 }
 0x2e8   :  { %v625_v12 = vpop.f32.mrb[14].mxu0  ;;  %966 = vtanh.f32 %v622_v11 }
 0x2e9   :  { %v626_v13 = vadd.f32 %v625_v12, %v495_v5  ;;  %v627_v14 = vpop.f32.mrb[15].mxu0  ;;  %v957_v16 = vpop.eup %956 }
 0x2ea   :  { %v628_v15 = vadd.f32 %v627_v14, %v495_v5  ;;  %v959_v17 = vpop.eup %958 }
 0x2eb   :  { %968 = vtanh.f32 %v626_v13 }
 0x2ec   :  { %970 = vtanh.f32 %v628_v15  ;;  %v631_v19 = vpop.f32.mrb[16].mxu0 }
 0x2ed   :  { %v961_v20 = vpop.eup %960  ;;  %v632_v21 = vadd.f32 %v631_v19, %v500_v18  ;;  %v633_v22 = vpop.f32.mrb[17].mxu0 }
 0x2ee   :  { %v963_v23 = vpop.eup %962  ;;  %v634_v24 = vadd.f32 %v633_v22, %v500_v18  ;;  %v861_v25 = vpack.c.bf16 %v961_v20, %v957_v16 }
 0x2ef   :  { %v859_v26 = vpack.c.bf16 %v963_v23, %v959_v17  ;;  %972 = vtanh.f32 %v632_v21 }
 0x2f0   :  { %v637_v28 = vpop.f32.mrb[18].mxu0  ;;  %974 = vtanh.f32 %v634_v24 }
 0x2f1   :  { %v638_v29 = vadd.f32 %v637_v28, %v505_v27  ;;  %v639_v30 = vpop.f32.mrb[19].mxu0  ;;  %860 = vmatprep.subr.bf16.mxu0 %v859_v26  ;;  %877 = vmatprep.subr.bf16.mxu1 %v859_v26  ;;  %v965_v32 = vpop.eup %964 }
 0x2f2   :  { %v640_v31 = vadd.f32 %v639_v30, %v505_v27  ;;  %862 = vmatpush1.bf16.msra.mxu0 %v861_v25  ;;  %881 = vmatpush1.bf16.msra.mxu1 %v861_v25  ;;  %v967_v33 = vpop.eup %966 }
 0x2f3   :  { %976 = vtanh.f32 %v638_v29 }
 0x2f4   :  { %978 = vtanh.f32 %v640_v31  ;;  %v643_v35 = vpop.f32.mrb[20].mxu0 }
 0x2f5   :  { %v969_v36 = vpop.eup %968  ;;  %v644_v37 = vadd.f32 %v643_v35, %v510_v34  ;;  %v645_v38 = vpop.f32.mrb[21].mxu0 }
 0x2f6   :  { %v971_v39 = vpop.eup %970  ;;  %v646_v40 = vadd.f32 %v645_v38, %v510_v34  ;;  %v865_v41 = vpack.c.bf16 %v969_v36, %v965_v32 }
 0x2f7   :  { %v863_v42 = vpack.c.bf16 %v971_v39, %v967_v33  ;;  %980 = vtanh.f32 %v644_v37 }
 0x2f8   :  { %v649_v44 = vpop.f32.mrb[22].mxu0  ;;  %982 = vtanh.f32 %v646_v40 }
 0x2f9   :  { %v650_v45 = vadd.f32 %v649_v44, %v515_v43  ;;  %v651_v46 = vpop.f32.mrb[23].mxu0  ;;  %864 = vmatprep.subr.bf16.mxu0 %v863_v42  ;;  %878 = vmatprep.subr.bf16.mxu1 %v863_v42  ;;  %v973_v48 = vpop.eup %972 }
 0x2fa   :  { %v652_v47 = vadd.f32 %v651_v46, %v515_v43  ;;  %866 = vmatpush1.bf16.msra.mxu0 %v865_v41  ;;  %882 = vmatpush1.bf16.msra.mxu1 %v865_v41  ;;  %v975_v49 = vpop.eup %974 }
 0x2fb   :  { %984 = vtanh.f32 %v650_v45 }
 0x2fc   :  { %986 = vtanh.f32 %v652_v47 }
 0x2fd   :  { %v977_v50 = vpop.eup %976 }
 0x2fe   :  { %v979_v51 = vpop.eup %978  ;;  %v869_v52 = vpack.c.bf16 %v977_v50, %v973_v48 }
 0x2ff   :  { %v867_v53 = vpack.c.bf16 %v979_v51, %v975_v49 }
 0x301   :  { %868 = vmatprep.subr.bf16.mxu0 %v867_v53  ;;  %879 = vmatprep.subr.bf16.mxu1 %v867_v53  ;;  %v981_v54 = vpop.eup %980 }
 0x302   :  { %870 = vmatpush1.bf16.msra.mxu0 %v869_v52  ;;  %883 = vmatpush1.bf16.msra.mxu1 %v869_v52  ;;  %v983_v55 = vpop.eup %982 }
 0x305   :  { %v985_v56 = vpop.eup %984 }
 0x306   :  { %v987_v57 = vpop.eup %986  ;;  %v873_v58 = vpack.c.bf16 %v985_v56, %v981_v54 }
 0x307   :  { %v871_v59 = vpack.c.bf16 %v987_v57, %v983_v55 }
 0x309   :  { %872 = vmatprep.subr.bf16.mxu0 %v871_v59  ;;  %880 = vmatprep.subr.bf16.mxu1 %v871_v59 }
 0x30a   :  { %874 = vmatpush1.bf16.msra.mxu0 %v873_v58  ;;  %884 = vmatpush1.bf16.msra.mxu1 %v873_v58 }
 0x30d   :  { %821 = vmatmul.mubr.msk.f32.vlgmr.msra.gmra.mrb[24].mxu0 %vm307_vm1, %v670_v60  ;;  %822 = vmatmul.mubr.msk.f32.vlgmr.msra.gmra.mrb[24].mxu1 %vm307_vm1, %v671_v61 }
 0x3e0   :  { %v756_v0 = vpop.f32.mrb[24].mxu0  ;;  %v762_v1 = vpop.f32.mrb[24].mxu1 }
 0x3e1   :  { %v757_v2 = vadd.f32 %v756_v0, %v677_v62  ;;  %v763_v3 = vadd.f32 %v762_v1, %v682_v63  ;;  %v758_v4 = vpop.f32.mrb[25].mxu0  ;;  %v764_v6 = vpop.f32.mrb[25].mxu1 }
 0x3e2   :  { %v759_v7 = vadd.f32 %v758_v4, %v677_v62  ;;  %v765_v8 = vadd.f32 %v764_v6, %v682_v63 }
 0x3e3   :  { %988 = vtanh.f32 %v757_v2 }
 0x3e4   :  { %990 = vtanh.f32 %v763_v3 }
 0x3e5   :  { %992 = vtanh.f32 %v759_v7 }
 0x3e6   :  { %994 = vtanh.f32 %v765_v8 }
 0x3ed   :  { %v989_v10 = vpop.eup %988 }
 0x3ee   :  { %v991_v11 = vpop.eup %990  ;;  %v773_v5 = vmul.f32 %v989_v10, %v772_v9 }
 0x3ef   :  { %v993_v12 = vpop.eup %992  ;;  %v775_v13 = vmul.f32 %v991_v11, %v772_v9 }
 0x3f0   :  { %v995_v14 = vpop.eup %994  ;;  %777 = vst [vmem:[#allocation3] sm:$0xff] %v773_v5  ;;  %v774_v15 = vmul.f32 %v993_v12, %v772_v9 }
 0x3f1   :  { %779 = vst [vmem:[#allocation3 + $0x10] sm:$0xff] %v775_v13  ;;  %v776_v16 = vmul.f32 %v995_v14, %v772_v9 }
 0x3f2   :  { %778 = vst [vmem:[#allocation3 + $0x8] sm:$0xff] %v774_v15 }
 0x3f3   :  { %780 = vst [vmem:[#allocation3 + $0x18] sm:$0xff] %v776_v16 }
 0x3f4   :  { %1007 = shalt.err (!%p1004_p4)
}
 0x3f5   :  { %s1008_s11 = scalar_lea.hbm %s1325_s10, 512 }
 0x3f6   :  { %p1009_p5 = scmp.ne.s32.totalorder %s1325_s10, %s1008_s11  ;;  %p1012_p6 = scmp.lt.u32.totalorder %s1008_s11, %s1325_s10 }
 0x3f8   :  { %p1014_p7 = pnand %p1012_p6, %p1009_p5 }
 0x3fa   :  { %1017 = shalt.err (!%p1014_p7)
}
 0x3fb   :  { %s1023_s13 = smov 256   ;;  %s1024_s1 = smov 16  }
 0x3fc   :  { %792 = dma.vmem_to_hbm [thread:$0]  %s787_s28, 512, %s1325_s10, [#allocation4], %s1023_s13, %s1023_s13, %s1024_s1  }
 0x3fd   :  { %1018 = dma.done.wait [#allocation4], 512  }
 0x3fe   :  { %1019 = vsyncadd [#allocation4], 4294966784 }
 0x3ff   :  { %796 = vsyncpa [#allocation4], 1 }

</bundles_post_ra>
